<compile_context>
chip_gen: v7x
topology: tpu7x:2x2x1
jax: 0.10.0
libtpu: 0.0.40
codegen_flags: <defaults>
</compile_context>

<pallas_src>
import numpy as np
import jax
import jax.numpy as jnp
from jax.experimental import pallas as pl
from jax.experimental.pallas import tpu as pltpu


def fmodel_kernel(x_ref, w1_ref, b1_ref, w2_ref, b2_ref, out_ref):
  """x:[TN,Kp]bf16 w1:[Kp,H]bf16 b1:[1,H]f32 w2:[H,Op]bf16 b2:[1,Op]f32 -> out:[TN,Op]f32."""
  f32 = jnp.float32

  # fc1 (bf16 MXU matmul, f32 accumulate) + bias.
  h = jnp.dot(x_ref[...], w1_ref[...], preferred_element_type=f32) + b1_ref[...]

  # TODO(synk): nn.Dropout omitted (inference-mode identity, matches model.eval()).
  h = jnp.maximum(h, 0.0)                                           # ReLU

  # fc2 (bf16 MXU matmul, f32 accumulate) + bias (padded cols carry -1e30).
  logits = jnp.dot(h.astype(jnp.bfloat16), w2_ref[...],
                   preferred_element_type=f32) + b2_ref[...]

  # log_softmax(dim=1), numerically stable.  Padded logit columns are ~-1e30
  # (finite), so they never win the max and exp() underflows to exactly 0.
  m = jnp.max(logits, axis=-1, keepdims=True)
  z = logits - m
  lse = jnp.log(jnp.sum(jnp.exp(z), axis=-1, keepdims=True))
  out_ref[...] = z - lse


def fmodel_forward(cat_b_embed,
                   hvb_mat, Wb, hvb_top,
                   hvf_mat, Wf, hvf_top,
                   hva_mat, Wa, hva_top,
                   nullA, d_onehot,
                   W1t, b1, W2t, b2,
                   row_tile=2048):
  """W1t: [in_dim, hidden], W2t: [hidden, out] (transposed vs. nn.Linear).

  row_tile: batch-row tile.  2048 amortizes per-grid-step overhead while the
  double-buffered footprint (~0.75 KB/row here) stays far below even v7x's
  64 MiB VMEM; v5e/v6e can raise it further.
  """
  f32, bf16 = jnp.float32, jnp.bfloat16
  N = cat_b_embed.shape[0]
  in_dim, H = W1t.shape
  O = W2t.shape[1]

  # --- Embedding contractions in XLA (once per call).  With real scipy-sparse
  # inputs this is the sparse mm / nonzero-index gather; vocab-width matrices
  # never become a kernel operand.
  hvb = hvb_mat @ Wb + hvb_top
  hvf = hvf_mat @ Wf + hvf_top
  hva = hva_mat @ Wa + hva_top

  # --- Compact activation slab [N, in_dim] (same concat order as the reference).
  x = jnp.concatenate(
      [cat_b_embed, hvb, hvf, hva, nullA.reshape(N, 1), d_onehot], axis=1)
  assert x.shape[1] == in_dim, (x.shape, in_dim)

  # --- Lane-dense padding of K (contraction) and O (output) to multiples of 128.
  Kp = pl.cdiv(in_dim, 128) * 128
  Op = pl.cdiv(O, 128) * 128

  # --- Batch tiling: rows multiple of 8 (f32/bf16 sublane); even step count
  # (when >1) so the parallel grid axis shards evenly across TensorCores.
  TN = max(8, min(row_tile, pl.cdiv(N, 8) * 8))
  steps = pl.cdiv(N, TN)
  if steps > 1 and steps % 2:
    steps += 1
  Np = steps * TN

  x = jnp.pad(x, ((0, Np - N), (0, Kp - in_dim))).astype(bf16)      # [Np, Kp]
  w1 = jnp.pad(W1t, ((0, Kp - in_dim), (0, 0))).astype(bf16)        # [Kp, H]
  w2 = jnp.pad(W2t, ((0, 0), (0, Op - O))).astype(bf16)             # [H, Op]
  b1r = b1.reshape(1, H).astype(f32)
  b2r = jnp.pad(b2.reshape(1, O).astype(f32),
                ((0, 0), (0, Op - O)), constant_values=-1e30)       # finite pad

  cost = pl.CostEstimate(
      flops=2 * Np * Kp * H + 2 * Np * H * Op,
      transcendentals=Np * Op,
      bytes_accessed=(2 * Np * Kp + 2 * Kp * H + 2 * H * Op
                      + 4 * (H + Op) + 4 * Np * Op))

  out = pl.pallas_call(
      fmodel_kernel,
      out_shape=jax.ShapeDtypeStruct((Np, Op), f32),
      grid=(steps,),
      in_specs=[
          pl.BlockSpec((TN, Kp), lambda i: (i, 0)),   # batch-tiled activations
          pl.BlockSpec((Kp, H), lambda i: (0, 0)),    # VMEM-resident weights
          pl.BlockSpec((1, H), lambda i: (0, 0)),
          pl.BlockSpec((H, Op), lambda i: (0, 0)),
          pl.BlockSpec((1, Op), lambda i: (0, 0)),
      ],
      out_specs=pl.BlockSpec((TN, Op), lambda i: (i, 0)),
      compiler_params=pltpu.CompilerParams(
          dimension_semantics=("parallel",),
          vmem_limit_bytes=48 * 1024 * 1024),
      cost_estimate=cost,
  )(x, w1, b1r, w2, b2r)

  return out[:N, :O]


def fmodel_reference(cat_b_embed, hvb_mat, Wb, hvb_top, hvf_mat, Wf, hvf_top,
                     hva_mat, Wa, hva_top, nullA, d_onehot, W1t, b1, W2t, b2):
  hvb = hvb_mat @ Wb + hvb_top
  hvf = hvf_mat @ Wf + hvf_top
  hva = hva_mat @ Wa + hva_top
  x = jnp.concatenate([cat_b_embed, hvb, hvf, hva, nullA[:, None], d_onehot], axis=1)
  h = jnp.maximum(x @ W1t + b1, 0.0)
  logits = h @ W2t + b2
  return jax.nn.log_softmax(logits, axis=1)


if __name__ == "__main__":
  # Small, deterministic synthetic configuration.
  N = 8                      # batch (number of decisions)
  catb_vocab, hvecb_vocab, hvecf_vocab, hveca_vocab = 16, 32, 32, 16
  syn_size, sem_size, ant_size = 8, 16, 8
  hidden_dim, output_dim = 32, 16
  in_dim = 8 + syn_size + 2 * sem_size + ant_size     # 56

  key = jax.random.PRNGKey(0)
  ks = jax.random.split(key, 16)

  # Embedding tables (deterministic "weights").
  catb_table = jax.random.normal(ks[0], (catb_vocab, syn_size), jnp.float32) * 0.1
  Wb = jax.random.normal(ks[1], (hvecb_vocab, sem_size), jnp.float32) * 0.1
  Wf = jax.random.normal(ks[2], (hvecf_vocab, sem_size), jnp.float32) * 0.1
  Wa = jax.random.normal(ks[3], (hveca_vocab, ant_size), jnp.float32) * 0.1

  # Linear layers (stored transposed: [in, out]).
  W1t = jax.random.normal(ks[4], (in_dim, hidden_dim), jnp.float32) * 0.1
  b1 = jax.random.normal(ks[5], (hidden_dim,), jnp.float32) * 0.1
  W2t = jax.random.normal(ks[6], (hidden_dim, output_dim), jnp.float32) * 0.1
  b2 = jax.random.normal(ks[7], (output_dim,), jnp.float32) * 0.1

  # Inputs.
  cat_b_ix = jax.random.randint(ks[8], (N,), 0, catb_vocab)
  cat_b_embed = jnp.take(catb_table, cat_b_ix, axis=0)          # glue: embedding lookup

  def sparse_like(k, shape):                                    # densified sparse matrix
    k1, k2 = jax.random.split(k)
    vals = jax.random.normal(k1, shape, jnp.float32)
    mask = (jax.random.uniform(k2, shape) < 0.2).astype(jnp.float32)
    return vals * mask

  hvb_mat = sparse_like(ks[9], (N, hvecb_vocab))
  hvf_mat = sparse_like(ks[10], (N, hvecf_vocab))
  hva_mat = sparse_like(ks[11], (N, hveca_vocab))
  hvb_top = jax.random.normal(ks[12], (N, sem_size), jnp.float32) * 0.1
  hvf_top = jax.random.normal(ks[13], (N, sem_size), jnp.float32) * 0.1
  hva_top = jax.random.normal(ks[14], (N, ant_size), jnp.float32) * 0.1
  nullA = jax.random.normal(ks[15], (N,), jnp.float32)
  d_onehot = jax.nn.one_hot(jnp.arange(N) % 7, 7, dtype=jnp.float32)

  out = fmodel_forward(cat_b_embed,
                       hvb_mat, Wb, hvb_top,
                       hvf_mat, Wf, hvf_top,
                       hva_mat, Wa, hva_top,
                       nullA, d_onehot,
                       W1t, b1, W2t, b2)
  out = jax.block_until_ready(out)

  ref = fmodel_reference(cat_b_embed, hvb_mat, Wb, hvb_top, hvf_mat, Wf, hvf_top,
                         hva_mat, Wa, hva_top, nullA, d_onehot, W1t, b1, W2t, b2)
  # bf16 matmul operands -> relaxed tolerance vs. the f32 reference.
  np.testing.assert_allclose(np.asarray(out), np.asarray(ref), rtol=2e-2, atol=2e-2)

  print("KERNEL_OK")
</pallas_src>

<mosaic_0001>
module attributes {stable_mosaic.version = 11 : i64} {
  func.func @fmodel_kernel(%arg0: i32, %arg1: memref<8x128xbf16, #tpu.memory_space<vmem>>, %arg2: memref<128x32xbf16, #tpu.memory_space<vmem>>, %arg3: memref<1x32xf32, #tpu.memory_space<vmem>>, %arg4: memref<32x128xbf16, #tpu.memory_space<vmem>>, %arg5: memref<1x128xf32, #tpu.memory_space<vmem>>, %arg6: memref<8x128xf32, #tpu.memory_space<vmem>>) attributes {dimension_semantics = [#tpu.dimension_semantics<parallel>], iteration_bounds = array<i64: 1>, scalar_prefetch = 0 : i64, scratch_operands = 0 : i64, tpu.core_type = #tpu.core_type<tc>, window_params = [{transform_indices = @transform_0, window_bounds = array<i64: 8, 128>}, {pipeline_mode = #tpu.pipeline_mode<synchronous>, transform_indices = @transform_1, window_bounds = array<i64: 128, 32>}, {pipeline_mode = #tpu.pipeline_mode<synchronous>, transform_indices = @transform_2, window_bounds = array<i64: 1, 32>}, {pipeline_mode = #tpu.pipeline_mode<synchronous>, transform_indices = @transform_3, window_bounds = array<i64: 32, 128>}, {pipeline_mode = #tpu.pipeline_mode<synchronous>, transform_indices = @transform_4, window_bounds = array<i64: 1, 128>}, {transform_indices = @transform_5, window_bounds = array<i64: 8, 128>}]} {
    %c0 = arith.constant 0 : index
    %c0_0 = arith.constant 0 : index
    %0 = vector.load %arg1[%c0, %c0_0] : memref<8x128xbf16, #tpu.memory_space<vmem>>, vector<8x128xbf16>
    %c0_1 = arith.constant 0 : index
    %c0_2 = arith.constant 0 : index
    %1 = vector.load %arg2[%c0_1, %c0_2] : memref<128x32xbf16, #tpu.memory_space<vmem>>, vector<128x32xbf16>
    %cst = arith.constant dense<0.000000e+00> : vector<8x32xf32>
    %2 = tpu.matmul %0, %1, %cst {dimension_numbers = #tpu.dot_dimension_numbers<[1], [0], [0], [1], [0, 0, 1, 1], [], []>} : vector<8x128xbf16>, vector<128x32xbf16>, vector<8x32xf32> -> vector<8x32xf32>
    %c0_3 = arith.constant 0 : index
    %c0_4 = arith.constant 0 : index
    %3 = vector.load %arg3[%c0_3, %c0_4] : memref<1x32xf32, #tpu.memory_space<vmem>>, vector<1x32xf32>
    %4 = vector.broadcast %3 : vector<1x32xf32> to vector<8x32xf32>
    %5 = arith.addf %2, %4 : vector<8x32xf32>
    %cst_5 = arith.constant 0.000000e+00 : f32
    %6 = vector.broadcast %cst_5 : f32 to vector<8x32xf32>
    %7 = arith.maximumf %5, %6 : vector<8x32xf32>
    %8 = arith.truncf %7 : vector<8x32xf32> to vector<8x32xbf16>
    %c0_6 = arith.constant 0 : index
    %c0_7 = arith.constant 0 : index
    %9 = vector.load %arg4[%c0_6, %c0_7] : memref<32x128xbf16, #tpu.memory_space<vmem>>, vector<32x128xbf16>
    %cst_8 = arith.constant dense<0.000000e+00> : vector<8x128xf32>
    %10 = tpu.matmul %8, %9, %cst_8 {dimension_numbers = #tpu.dot_dimension_numbers<[1], [0], [0], [1], [0, 0, 1, 1], [], []>} : vector<8x32xbf16>, vector<32x128xbf16>, vector<8x128xf32> -> vector<8x128xf32>
    %c0_9 = arith.constant 0 : index
    %c0_10 = arith.constant 0 : index
    %11 = vector.load %arg5[%c0_9, %c0_10] : memref<1x128xf32, #tpu.memory_space<vmem>>, vector<1x128xf32>
    %12 = vector.broadcast %11 : vector<1x128xf32> to vector<8x128xf32>
    %13 = arith.addf %10, %12 : vector<8x128xf32>
    %cst_11 = arith.constant dense<0xFF800000> : vector<8xf32>
    %14 = vector.multi_reduction <maximumf>, %13, %cst_11 [1] : vector<8x128xf32> to vector<8xf32>
    %15 = vector.shape_cast %14 : vector<8xf32> to vector<8x1xf32>
    %16 = vector.broadcast %15 : vector<8x1xf32> to vector<8x128xf32>
    %17 = arith.subf %13, %16 : vector<8x128xf32>
    %18 = math.exp %17 : vector<8x128xf32>
    %cst_12 = arith.constant dense<0.000000e+00> : vector<8xf32>
    %19 = vector.multi_reduction <add>, %18, %cst_12 [1] : vector<8x128xf32> to vector<8xf32>
    %20 = vector.shape_cast %19 : vector<8xf32> to vector<8x1xf32>
    %21 = math.log %20 : vector<8x1xf32>
    %22 = vector.broadcast %21 : vector<8x1xf32> to vector<8x128xf32>
    %23 = arith.subf %17, %22 : vector<8x128xf32>
    %c0_13 = arith.constant 0 : index
    %c0_14 = arith.constant 0 : index
    %24 = vector.load %arg6[%c0_13, %c0_14] : memref<8x128xf32, #tpu.memory_space<vmem>>, vector<8x128xf32>
    tpu.vector_store %arg6[%c0_13, %c0_14], %23 {strides = array<i32>} : memref<8x128xf32, #tpu.memory_space<vmem>>, vector<8x128xf32>,
    return
  }
  func.func @transform_0(%arg0: i32) -> (i32, i32) {
    %c0_i32 = arith.constant 0 : i32
    %c0_i32_0 = arith.constant 0 : i32
    return %arg0, %c0_i32 : i32, i32
  }
  func.func @transform_1(%arg0: i32) -> (i32, i32) {
    %c0_i32 = arith.constant 0 : i32
    %c0_i32_0 = arith.constant 0 : i32
    %c0_i32_1 = arith.constant 0 : i32
    return %c0_i32, %c0_i32_0 : i32, i32
  }
  func.func @transform_2(%arg0: i32) -> (i32, i32) {
    %c0_i32 = arith.constant 0 : i32
    %c0_i32_0 = arith.constant 0 : i32
    %c0_i32_1 = arith.constant 0 : i32
    return %c0_i32, %c0_i32_0 : i32, i32
  }
  func.func @transform_3(%arg0: i32) -> (i32, i32) {
    %c0_i32 = arith.constant 0 : i32
    %c0_i32_0 = arith.constant 0 : i32
    %c0_i32_1 = arith.constant 0 : i32
    return %c0_i32, %c0_i32_0 : i32, i32
  }
  func.func @transform_4(%arg0: i32) -> (i32, i32) {
    %c0_i32 = arith.constant 0 : i32
    %c0_i32_0 = arith.constant 0 : i32
    %c0_i32_1 = arith.constant 0 : i32
    return %c0_i32, %c0_i32_0 : i32, i32
  }
  func.func @transform_5(%arg0: i32) -> (i32, i32) {
    %c0_i32 = arith.constant 0 : i32
    %c0_i32_0 = arith.constant 0 : i32
    return %arg0, %c0_i32 : i32, i32
  }
}

</mosaic_0001>

<bundles_post_ra>
// kernel: tpu_custom_call.1
= control target key start
LH: loop header
LB: loop body
LE: loop exit
PB: predicated region body
PF: predicated region fallthrough
CT: control target
= control target key end

     0   :  { %v322_v1 = vmov 0.0   ;;  %vm323_vm0 = vmmov 0   ;;  %s406_s0 = inlined_call_operand.vmem [shape: bf16[8,128], index: 0, kind: input, shape index: {}]   ;;  %s407_s1 = inlined_call_operand.vmem [shape: bf16[128,32], index: 1, kind: input, shape index: {}]   ;;  %s408_s2 = inlined_call_operand.vmem [shape: f32[1,32], index: 2, kind: input, shape index: {}]   ;;  %s409_s3 = inlined_call_operand.vmem [shape: bf16[32,128], index: 3, kind: input, shape index: {}]   ;;  %s410_s4 = inlined_call_operand.vmem [shape: f32[1,128], index: 4, kind: input, shape index: {}]   ;;  %s411_s5 = inlined_call_operand.hbm [shape: f32[8,128], index: 5, kind: output, shape index: {}]  }
   0x1   :  { %v284_v0 = vld [vmem:[%s407_s1] sm:$0xff]   ;;  %253 = vmatprep.subr.bf16.mxu0 %v322_v1  ;;  %273 = vmatprep.subr.bf16.mxu1 %v322_v1  ;;  %v285_v2 = vld [vmem:[%s407_s1 + $0x8] sm:$0xff]   ;;  %v286_v3 = vld [vmem:[%s407_s1 + $0x10] sm:$0xff]  }
   0x2   :  { %254 = vmatpush3.bf16.msra.mxu0 %v284_v0  ;;  %269 = vmatprep.mubr.msk.bf16.mxu0 %vm323_vm0, %v322_v1  ;;  %v287_v4 = vld [vmem:[%s407_s1 + $0x18] sm:$0xff]  }
   0x3   :  { %255 = vmatprep.subr.bf16.mxu0 %v322_v1  ;;  %277 = vmatprep.mubr.msk.bf16.mxu1 %vm323_vm0, %v322_v1 }
   0x6   :  { %256 = vmatpush3.bf16.msra.mxu0 %v285_v2 }
   0x7   :  { %257 = vmatprep.subr.bf16.mxu0 %v322_v1 }
   0xa   :  { %258 = vmatpush3.bf16.msra.mxu0 %v286_v3 }
   0xb   :  { %10 = vsyncpa [#allocation3], 0  ;;  %259 = vmatprep.subr.bf16.mxu0 %v322_v1  ;;  %v288_v5 = vld [vmem:[%s407_s1 + $0x20] sm:$0xff]   ;;  %v289_v6 = vld [vmem:[%s407_s1 + $0x28] sm:$0xff]   ;;  %vm159_vm1 = vcmask 261120  }
   0xc   :  { %v290_v7 = vld [vmem:[%s407_s1 + $0x30] sm:$0xff]   ;;  %v291_v8 = vld [vmem:[%s407_s1 + $0x38] sm:$0xff]   ;;  %v22_v9 = vld [vmem:[%s406_s0] sm:$0xf] }
   0xd   :  { %v292_v10 = vld [vmem:[%s409_s3] sm:$0xff]   ;;  %v293_v11 = vld [vmem:[%s409_s3 + $0x8] sm:$0xff]  }
   0xe   :  { %260 = vmatpush3.bf16.msra.mxu0 %v287_v4  ;;  %274 = vmatpush3.bf16.msra.mxu1 %v292_v10  ;;  %v228_v12 = vld [vmem:[%s408_s2] ss:$0 sm:$0xff]  ;;  %s324_s2 = smov [#allocation2]  }
   0xf   :  { %261 = vmatprep.subr.bf16.mxu0 %v322_v1  ;;  %275 = vmatprep.subr.bf16.mxu1 %v322_v1  ;;  %v237_v20 = vld [vmem:[%s410_s4] ss:$0 sm:$0xff]  ;;  %s220_s3 = sshll.u32 %s324_s2, 4  ;;  %s221_s3 = int_to_ptr.vmem [resolvable:$true] %s220_s3 }
  0x10   :  { %s298_s4 = scalar_lea.vmem %s221_s3, 128  ;;  %p303_p1 = scmp.lt.s32.totalorder %s221_s3, %s221_s3 }
  0x11   :  { %p299_p0 = scmp.ne.s32.totalorder %s221_s3, %s298_s4  ;;  %p304_p2 = scmp.lt.s32.totalorder %s298_s4, %s298_s4 }
  0x12   :  { %262 = vmatpush3.bf16.msra.mxu0 %v288_v5  ;;  %276 = vmatpush3.bf16.msra.mxu1 %v293_v11 }
  0x13   :  { %263 = vmatprep.subr.bf16.mxu0 %v322_v1  ;;  %p305_p3 = por %p304_p2, %p303_p1 }
  0x15   :  { %p306_p4 = pnand %p305_p3, %p299_p0 }
  0x16   :  { %264 = vmatpush3.bf16.msra.mxu0 %v289_v6 }
  0x17   :  { %265 = vmatprep.subr.bf16.mxu0 %v322_v1 }
  0x1a   :  { %266 = vmatpush3.bf16.msra.mxu0 %v290_v7 }
  0x1b   :  { %267 = vmatprep.subr.bf16.mxu0 %v322_v1 }
  0x1e   :  { %268 = vmatpush3.bf16.msra.mxu0 %v291_v8 }
  0x21   :  { %270 = vmatmul.mubr.bf16.vlgmr.msra.gmra.mrb[0].mxu0 %v22_v9 }
  0xf4   :  { %v128_v13 = vpop.f32.mrb[0].mxu0 }
  0xf5   :  { %v129_v14 = vadd.f32 %v228_v12, %v128_v13  ;;  %v271_v15 = vpop.f32.mrb[1].mxu0 }
  0xf6   :  { %v131_v16 = vpop.f32.mrb[2].mxu0 }
  0xf7   :  { %v134_v17 = vmax.f32 %v129_v14, 0.0  ;;  %v272_v18 = vpop.f32.mrb[3].mxu0 }
  0xf9   :  { %v135_v19 = vpack.c.bf16 %v134_v17, %v134_v17 }
  0xfb   :  { %278 = vmatmul.mubr.msk.bf16.vlgmr.msra.gmra.mrb[0].mxu1 %vm159_vm1, %v135_v19 }
 0x1ce   :  { %v197_v21 = vpop.f32.mrb[0].mxu1 }
 0x1cf   :  { %v198_v22 = vadd.f32 %v237_v20, %v197_v21  ;;  %v279_v23 = vpop.f32.mrb[1].mxu1 }
 0x1d0   :  { %v200_v24 = vpop.f32.mrb[2].mxu1 }
 0x1d1   :  { %203 = vmax.xlane.f32.xlu0 %v198_v22  ;;  %v280_v25 = vpop.f32.mrb[3].mxu1 }
 0x25e   :  { %v204_v26 = vpop.xlane.xlu0 %203 }
 0x25f   :  { %v205_v27 = vsub.f32 %v198_v22, %v204_v26 }
 0x261   :  { %v206_v28 = vmul.f32 1.442695, %v205_v27 }
 0x263   :  { %294 = vpow2.f32 %v206_v28 }
 0x26d   :  { %v295_v29 = vpop.eup %294 }
 0x26e   :  { %208 = vadd.xlane.f32.xlu0 %v295_v29 }
 0x2fb   :  { %v209_v30 = vpop.xlane.xlu0 %208 }
 0x2fc   :  { %296 = vlog2.f32 %v209_v30 }
 0x306   :  { %v297_v31 = vpop.eup %296 }
 0x307   :  { %v211_v32 = vmul.f32 0.6931472, %v297_v31 }
 0x309   :  { %v212_v33 = vsub.f32 %v205_v27, %v211_v32 }
 0x30b   :  { %213 = vst [vmem:[#allocation2] sm:$0xff] %v212_v33 }
 0x30c   :  { %309 = shalt.err (!%p306_p4)
}
 0x30d   :  { %s310_s19 = scalar_lea.hbm %s411_s5, 128 }
 0x30e   :  { %p311_p5 = scmp.ne.s32.totalorder %s411_s5, %s310_s19  ;;  %p314_p6 = scmp.lt.u32.totalorder %s310_s19, %s411_s5 }
 0x310   :  { %p316_p7 = pnand %p314_p6, %p311_p5 }
 0x312   :  { %319 = shalt.err (!%p316_p7)
}
 0x313   :  { %223 = dma.vmem_to_hbm [thread:$0]  %s221_s3, 128, %s411_s5, [#allocation3]  }
 0x314   :  { %320 = dma.done.wait [#allocation3], 128  }
 0x315   :  { %321 = vsyncadd [#allocation3], 4294967168 }
 0x316   :  { %227 = vsyncpa [#allocation3], 1 }

</bundles_post_ra>
